<compile_context>
chip_gen: v7x
topology: tpu7x:2x2x1
jax: 0.10.0
libtpu: 0.0.40
codegen_flags: <defaults>
</compile_context>

<pallas_src>
import functools

import jax
import jax.numpy as jnp
from jax.experimental import pallas as pl
from jax.experimental.pallas import tpu as pltpu


def _round_up(x, m):
    return ((x + m - 1) // m) * m


# ------------------------------ kernels ---------------------------------------

def _fused_resident_kernel(x_ref, w_ref, b_ref, h_ref, v_ref, o_ref, *, n_out):
    # Whole contraction in one MXU call; W/bias are resident across the M grid.
    y = jnp.dot(x_ref[...], w_ref[...], preferred_element_type=jnp.float32)
    y = y + b_ref[...]
    # n_out is a multiple of 128 -> lane-aligned static slices, unmasked stores.
    h_ref[...] = y[:, 0 * n_out:1 * n_out].astype(h_ref.dtype)
    v_ref[...] = y[:, 1 * n_out:2 * n_out].astype(v_ref.dtype)
    o_ref[...] = y[:, 2 * n_out:3 * n_out].astype(o_ref.dtype)


def _fused_splitk_kernel(x_ref, w_ref, b_ref, h_ref, v_ref, o_ref, acc_ref, *, n_out):
    k = pl.program_id(1)

    @pl.when(k == 0)
    def _():
        acc_ref[...] = jnp.zeros_like(acc_ref)

    acc_ref[...] += jnp.dot(x_ref[...], w_ref[...],
                            preferred_element_type=jnp.float32)

    @pl.when(k == pl.num_programs(1) - 1)
    def _():
        y = acc_ref[...] + b_ref[...]
        h_ref[...] = y[:, 0 * n_out:1 * n_out].astype(h_ref.dtype)
        v_ref[...] = y[:, 1 * n_out:2 * n_out].astype(v_ref.dtype)
        o_ref[...] = y[:, 2 * n_out:3 * n_out].astype(o_ref.dtype)


# ------------------------------ wrapper ---------------------------------------

def output_adapter_forward(x, w, b, output_dim, *, tm=512, compute_dtype=None,
                           force_split_k=False):
    """x: (B, S, d_model); w: (d_model, 3*output_dim) (transposed vs torch (out,in));
    b: (1, 3*output_dim).  Returns (h_logits, v_logits, o_logits), each (B, S, output_dim)."""
    B, S, K = x.shape
    N = int(output_dim)
    assert w.shape == (K, 3 * N), w.shape
    assert b.shape == (1, 3 * N), b.shape

    out_dtype = x.dtype
    cdt = jnp.dtype(compute_dtype) if compute_dtype is not None else jnp.dtype(x.dtype)
    ds = cdt.itemsize
    out_ds = jnp.dtype(out_dtype).itemsize
    sub = 8 * max(1, 4 // ds)           # sublane rounding: 8 for f32, 16 for bf16
    LANE = 128

    M = B * S
    Np = _round_up(N, LANE)             # per-logit output width, lane-dense
    threeNp = 3 * Np

    xf = x.reshape(M, K).astype(cdt)
    wf = w.astype(cdt)
    bf = b.astype(jnp.float32)          # bias stays f32 (added to the f32 product)
    if Np != N:
        # Pad each of the 3 logit groups up to a 128 multiple (zero columns, trimmed
        # after the kernel). Weight/bias only -> tiny one-off cost, no activation pad.
        wf = jnp.pad(wf.reshape(K, 3, N), ((0, 0), (0, 0), (0, Np - N))).reshape(K, threeNp)
        bf = jnp.pad(bf.reshape(1, 3, N), ((0, 0), (0, 0), (0, Np - N))).reshape(1, threeNp)

    # --- generation-aware VMEM budget -----------------------------------------
    try:
        vmem_cap = int(pltpu.get_tpu_info().vmem_capacity_bytes)
    except Exception:
        vmem_cap = 64 * 1024 * 1024
    vmem_limit = int((vmem_cap * 3) // 4)        # ~48 MiB on v7x, ~96 MiB on v5e/v6e
    budget = (vmem_limit * 17) // 20             # headroom for compiler-internal scratch

    # --- M tile: sublane aligned, >=2 tiles when M permits (v7x megacore) ------
    if M > sub:
        tm_sel = min(_round_up(max(tm, sub), sub),
                     _round_up(pl.cdiv(M, 2), sub))
    else:
        tm_sel = _round_up(M, sub)

    out_shapes = tuple(jax.ShapeDtypeStruct((M, Np), out_dtype) for _ in range(3))
    cost = pl.CostEstimate(
        flops=2 * M * K * threeNp,
        transcendentals=0,
        bytes_accessed=M * K * ds + K * threeNp * ds + threeNp * 4 + 3 * M * Np * out_ds)

    # --- resident-weight fast path ---------------------------------------------
    def _resident_need(tm_):
        return (2 * tm_ * K * ds            # x double-buffer
                + 2 * K * threeNp * ds      # weight (conservatively 2 buffers)
                + 2 * threeNp * 4           # bias
                + 6 * tm_ * Np * out_ds)    # 3 outputs, double-buffered

    use_resident = not force_split_k
    tm_r = tm_sel
    if use_resident:
        while _resident_need(tm_r) > budget and tm_r > sub:
            tm_r = max(sub, _round_up(tm_r // 2, sub))
        use_resident = _resident_need(tm_r) <= budget

    if use_resident:
        grid = (pl.cdiv(M, tm_r),)
        h, v, o = pl.pallas_call(
            functools.partial(_fused_resident_kernel, n_out=Np),
            out_shape=out_shapes,
            grid=grid,
            in_specs=[
                pl.BlockSpec((tm_r, K), lambda m: (m, 0)),          # activation tile
                pl.BlockSpec((K, threeNp), lambda m: (0, 0)),       # resident weight
                pl.BlockSpec((1, threeNp), lambda m: (0, 0)),       # resident bias
            ],
            out_specs=tuple(pl.BlockSpec((tm_r, Np), lambda m: (m, 0)) for _ in range(3)),
            compiler_params=pltpu.CompilerParams(
                dimension_semantics=("parallel",),
                vmem_limit_bytes=vmem_limit),
            cost_estimate=cost,
        )(xf, wf, bf)
    else:
        # --- split-K fallback (very large d_model) -----------------------------
        # largest 128-multiple divisor of K up to 512; full K otherwise.
        tk = 0
        cand = min(512, (K // LANE) * LANE)
        while cand >= LANE:
            if K % cand == 0:
                tk = cand
                break
            cand -= LANE
        if tk == 0:
            tk = K  # TODO(synk): zero-pad K to a 128 multiple for huge, odd d_model.

        def _splitk_need(tm_):
            return (2 * tm_ * tk * ds + 3 * tk * threeNp * ds + 2 * threeNp * 4
                    + tm_ * threeNp * 4 + 6 * tm_ * Np * out_ds)

        tm_k = tm_sel
        while _splitk_need(tm_k) > budget and tm_k > sub:
            tm_k = max(sub, _round_up(tm_k // 2, sub))

        w_map = lambda m, k: (k, 0)
        try:
            # deeper buffering hides the large (tk, 3N) weight DMA behind the matmuls
            w_spec = pl.BlockSpec((tk, threeNp), w_map, pipeline_mode=pl.Buffered(3))
        except Exception:
            w_spec = pl.BlockSpec((tk, threeNp), w_map)

        grid = (pl.cdiv(M, tm_k), K // tk)
        h, v, o = pl.pallas_call(
            functools.partial(_fused_splitk_kernel, n_out=Np),
            out_shape=out_shapes,
            grid=grid,
            in_specs=[
                pl.BlockSpec((tm_k, tk), lambda m, k: (m, k)),
                w_spec,
                pl.BlockSpec((1, threeNp), lambda m, k: (0, 0)),
            ],
            out_specs=tuple(pl.BlockSpec((tm_k, Np), lambda m, k: (m, 0)) for _ in range(3)),
            scratch_shapes=[pltpu.VMEM((tm_k, threeNp), jnp.float32)],
            compiler_params=pltpu.CompilerParams(
                dimension_semantics=("parallel", "arbitrary"),
                vmem_limit_bytes=vmem_limit),
            cost_estimate=cost,
        )(xf, wf, bf)

    def _finish(t):
        return t[:, :N].reshape(B, S, N)

    return _finish(h), _finish(v), _finish(o)


# ------------------------------ params ----------------------------------------

def init_params(key, d_model, output_dim, initrange=0.1):
    # Matches OutputAdapter.init_weights: weight ~ U(-0.1, 0.1), bias = 0.
    w = jax.random.uniform(key, (d_model, 3 * output_dim), jnp.float32,
                           minval=-initrange, maxval=initrange)
    b = jnp.zeros((1, 3 * output_dim), jnp.float32)
    return w, b


def _reference(x, w, b, output_dim):
    B, S, K = x.shape
    y = x.reshape(B * S, K) @ w + b
    y = y.reshape(B, S, 3, output_dim)
    return y[:, :, 0, :], y[:, :, 1, :], y[:, :, 2, :]


# -------------------------------- main -----------------------------------------

if __name__ == "__main__":
    key = jax.random.PRNGKey(0)

    # --- test 1: resident-weight fast path, f32 -------------------------------
    B, S, d_model, output_dim = 2, 8, 32, 128
    kw, kx, key = jax.random.split(key, 3)
    w, b = init_params(kw, d_model, output_dim)
    x = jax.random.normal(kx, (B, S, d_model), jnp.float32)

    outs = jax.block_until_ready(output_adapter_forward(x, w, b, output_dim))
    refs = _reference(x, w, b, output_dim)
    for got, want in zip(outs, refs):
        assert got.shape == (B, S, output_dim) and got.dtype == jnp.float32
        assert bool(jnp.all(jnp.isfinite(got)))
        assert jnp.allclose(got, want, atol=1e-5, rtol=1e-5)

    # --- test 2: same shapes, bf16 MXU feed with f32 accumulation --------------
    outs_bf = jax.block_until_ready(
        output_adapter_forward(x, w, b, output_dim, compute_dtype=jnp.bfloat16))
    for got, want in zip(outs_bf, refs):
        assert got.shape == (B, S, output_dim) and got.dtype == jnp.float32
        assert bool(jnp.all(jnp.isfinite(got)))
        assert jnp.allclose(got, want, atol=5e-2, rtol=5e-2)

    # --- test 3: split-K fallback + ragged M + non-128 output_dim --------------
    B2, S2, d_model2, output_dim2 = 2, 5, 1024, 96
    kw2, kx2, key = jax.random.split(key, 3)
    w2, b2 = init_params(kw2, d_model2, output_dim2)
    x2 = jax.random.normal(kx2, (B2, S2, d_model2), jnp.float32)

    outs2 = jax.block_until_ready(
        output_adapter_forward(x2, w2, b2, output_dim2, force_split_k=True))
    refs2 = _reference(x2, w2, b2, output_dim2)
    for got, want in zip(outs2, refs2):
        assert got.shape == (B2, S2, output_dim2) and got.dtype == jnp.float32
        assert bool(jnp.all(jnp.isfinite(got)))
        assert jnp.allclose(got, want, atol=1e-4, rtol=1e-4)

    print("KERNEL_OK")
</pallas_src>

<mosaic_0001>
module attributes {stable_mosaic.version = 11 : i64} {
  func.func @_fused_resident_kernel(%arg0: i32, %arg1: memref<8x32xf32, #tpu.memory_space<vmem>>, %arg2: memref<32x384xf32, #tpu.memory_space<vmem>>, %arg3: memref<1x384xf32, #tpu.memory_space<vmem>>, %arg4: memref<8x128xf32, #tpu.memory_space<vmem>>, %arg5: memref<8x128xf32, #tpu.memory_space<vmem>>, %arg6: memref<8x128xf32, #tpu.memory_space<vmem>>) attributes {dimension_semantics = [#tpu.dimension_semantics<parallel>], iteration_bounds = array<i64: 2>, scalar_prefetch = 0 : i64, scratch_operands = 0 : i64, tpu.core_type = #tpu.core_type<tc>, window_params = [{transform_indices = @transform_0, window_bounds = array<i64: 8, 32>}, {pipeline_mode = #tpu.pipeline_mode<synchronous>, transform_indices = @transform_1, window_bounds = array<i64: 32, 384>}, {pipeline_mode = #tpu.pipeline_mode<synchronous>, transform_indices = @transform_2, window_bounds = array<i64: 1, 384>}, {transform_indices = @transform_3, window_bounds = array<i64: 8, 128>}, {transform_indices = @transform_4, window_bounds = array<i64: 8, 128>}, {transform_indices = @transform_5, window_bounds = array<i64: 8, 128>}]} {
    %c0 = arith.constant 0 : index
    %c0_0 = arith.constant 0 : index
    %0 = vector.load %arg1[%c0, %c0_0] : memref<8x32xf32, #tpu.memory_space<vmem>>, vector<8x32xf32>
    %c0_1 = arith.constant 0 : index
    %c0_2 = arith.constant 0 : index
    %1 = vector.load %arg2[%c0_1, %c0_2] : memref<32x384xf32, #tpu.memory_space<vmem>>, vector<32x384xf32>
    %cst = arith.constant dense<0.000000e+00> : vector<8x384xf32>
    %2 = tpu.matmul %0, %1, %cst {dimension_numbers = #tpu.dot_dimension_numbers<[1], [0], [0], [1], [0, 0, 1, 1], [], []>} : vector<8x32xf32>, vector<32x384xf32>, vector<8x384xf32> -> vector<8x384xf32>
    %c0_3 = arith.constant 0 : index
    %c0_4 = arith.constant 0 : index
    %3 = vector.load %arg3[%c0_3, %c0_4] : memref<1x384xf32, #tpu.memory_space<vmem>>, vector<1x384xf32>
    %4 = vector.broadcast %3 : vector<1x384xf32> to vector<8x384xf32>
    %5 = arith.addf %2, %4 : vector<8x384xf32>
    %6 = vector.extract_strided_slice %5 {offsets = [0, 0], sizes = [8, 128], strides = [1, 1]} : vector<8x384xf32> to vector<8x128xf32>
    %c0_5 = arith.constant 0 : index
    %c0_6 = arith.constant 0 : index
    %7 = vector.load %arg4[%c0_5, %c0_6] : memref<8x128xf32, #tpu.memory_space<vmem>>, vector<8x128xf32>
    tpu.vector_store %arg4[%c0_5, %c0_6], %6 {strides = array<i32>} : memref<8x128xf32, #tpu.memory_space<vmem>>, vector<8x128xf32>,
    %8 = vector.extract_strided_slice %5 {offsets = [0, 128], sizes = [8, 128], strides = [1, 1]} : vector<8x384xf32> to vector<8x128xf32>
    %c0_7 = arith.constant 0 : index
    %c0_8 = arith.constant 0 : index
    %9 = vector.load %arg5[%c0_7, %c0_8] : memref<8x128xf32, #tpu.memory_space<vmem>>, vector<8x128xf32>
    tpu.vector_store %arg5[%c0_7, %c0_8], %8 {strides = array<i32>} : memref<8x128xf32, #tpu.memory_space<vmem>>, vector<8x128xf32>,
    %10 = vector.extract_strided_slice %5 {offsets = [0, 256], sizes = [8, 128], strides = [1, 1]} : vector<8x384xf32> to vector<8x128xf32>
    %c0_9 = arith.constant 0 : index
    %c0_10 = arith.constant 0 : index
    %11 = vector.load %arg6[%c0_9, %c0_10] : memref<8x128xf32, #tpu.memory_space<vmem>>, vector<8x128xf32>
    tpu.vector_store %arg6[%c0_9, %c0_10], %10 {strides = array<i32>} : memref<8x128xf32, #tpu.memory_space<vmem>>, vector<8x128xf32>,
    return
  }
  func.func @transform_0(%arg0: i32) -> (i32, i32) {
    %c0_i32 = arith.constant 0 : i32
    %c0_i32_0 = arith.constant 0 : i32
    return %arg0, %c0_i32 : i32, i32
  }
  func.func @transform_1(%arg0: i32) -> (i32, i32) {
    %c0_i32 = arith.constant 0 : i32
    %c0_i32_0 = arith.constant 0 : i32
    %c0_i32_1 = arith.constant 0 : i32
    return %c0_i32, %c0_i32_0 : i32, i32
  }
  func.func @transform_2(%arg0: i32) -> (i32, i32) {
    %c0_i32 = arith.constant 0 : i32
    %c0_i32_0 = arith.constant 0 : i32
    %c0_i32_1 = arith.constant 0 : i32
    return %c0_i32, %c0_i32_0 : i32, i32
  }
  func.func @transform_3(%arg0: i32) -> (i32, i32) {
    %c0_i32 = arith.constant 0 : i32
    %c0_i32_0 = arith.constant 0 : i32
    return %arg0, %c0_i32 : i32, i32
  }
  func.func @transform_4(%arg0: i32) -> (i32, i32) {
    %c0_i32 = arith.constant 0 : i32
    %c0_i32_0 = arith.constant 0 : i32
    return %arg0, %c0_i32 : i32, i32
  }
  func.func @transform_5(%arg0: i32) -> (i32, i32) {
    %c0_i32 = arith.constant 0 : i32
    %c0_i32_0 = arith.constant 0 : i32
    return %arg0, %c0_i32 : i32, i32
  }
}

</mosaic_0001>

<bundles_post_ra>
// kernel: tpu_custom_call.1
= control target key start
LH: loop header
LB: loop body
LE: loop exit
PB: predicated region body
PF: predicated region fallthrough
CT: control target
= control target key end

     0   :  { %s1270_s0 = inlined_call_operand.hbm [shape: f32[16,32], index: 0, kind: input, shape index: {}]   ;;  %s1271_s1 = inlined_call_operand.hbm [shape: f32[32,384], index: 1, kind: input, shape index: {}]   ;;  %s1272_s2 = inlined_call_operand.vmem [shape: f32[1,384], index: 2, kind: input, shape index: {}]   ;;  %s1273_s3 = inlined_call_operand.hbm [shape: f32[16,128], index: 3, kind: output, shape index: {0}]   ;;  %s1274_s4 = inlined_call_operand.hbm [shape: f32[16,128], index: 4, kind: output, shape index: {1}]   ;;  %s1275_s5 = inlined_call_operand.hbm [shape: f32[16,128], index: 5, kind: output, shape index: {2}]  }
   0x1   :  { %1280 = sst [smem:[#allocation15_spill]] %s1270_s0 }
   0x2   :  { %1281 = sst [smem:[#allocation16_spill]] %s1271_s1 }
   0x3   :  { %11 = vsyncpa [#allocation3], 0 }
   0x4   :  { %13 = vsyncpa [#allocation3 + $0x1], 0 }
   0x5   :  { %14 = vsyncpa [#allocation6], 0 }
   0x6   :  { %15 = vsyncpa [#allocation4], 0 }
   0x7   :  { %17 = vsyncpa [#allocation4 + $0x1], 0 }
   0x8   :  { %18 = vsyncpa [#allocation9], 0 }
   0x9   :  { %20 = vsyncpa [#allocation9 + $0x1], 0  ;;  %s996_s18 = smov 0   ;;  %s998_s19 = smov 0  }
   0xa   :  { %s1000_s20 = smov 0   ;;  %s1002_s21 = smov 0  }
   0xb LB: > { %s1017_s22 = sadd.s32 4294967295, %s954_s21   ;;  %s1279_s23 = sadd.s32 4294967294, %s954_s21   ;;  %s954_s21 = sphi %s1002_s21, %s1302_s21   ;;  %s950_s20 = sphi %s1000_s20, %s1301_s20   ;;  %s946_s19 = sphi %s998_s19, %s1300_s19   ;;  %s942_s18 = sphi %s996_s18, %s1299_s18  }
   0xc   : > { %p46_p0 = scmp.ne.s32.totalorder %s946_s19, %s942_s18  ;;  %p1276_p1 = scmp.eq.s32.totalorder %s1017_s22, 0 }
   0xd   : > { %p118_p3 = scmp.eq.s32.totalorder %s1279_s23, 1  ;;  %p643_p5 = scmp.ge.s32.totalorder %s954_s21, 1 }
   0xe   : > { %p1028_p4 = por %p1276_p1, %p46_p0  ;;  %p177_p7 = scmp.lt.s32.totalorder %s954_s21, 3 }
   0xf   : > { %p1033_p6 = por %p118_p3, %p46_p0  ;;  %s956_s27 = smov [#allocation5]  }
  0x10   : > { %s1282_s24 = scalar_select %p1028_p4, 1, 0 }
  0x11   : > { %s1283_s25 = scalar_select %p1033_p6, 1, 0 }
  0x12   : > { %p1038_p8 = pnand %p643_p5, %p177_p7  ;;  %s189_s28 = sshll.u32 %s956_s27, 4  ;;  %s1042_s28 = int_to_ptr.vmem [resolvable:$true] %s189_s28 }
  0x13   : > { %s1054_s30 = sadd.s32 1, %s954_s21   ;;  %s33_s6 = sadd.s32 1, %s950_s20 }
  0x14   : > { %s1284_s26 = scalar_select %p1038_p8, 1, 0 }
  0x15   : > { %p706_p9 = pneg %p1038_p8  ;;  %s30_s7 = ssub.s32 %s954_s21, %s1054_s30 }
  0x16   : > { %s1286_s1 = sld [smem:[#allocation16_spill]] }
  0x17   : > { %p1049_p11 = pnand %p706_p9, %p1276_p1 }
  0x19   : > { %p768_p13 = pneg %p1049_p11 }
  0x1c   : > { %s766_s10 = scalar_lea.hbm %s1286_s1, 1536 }
  0x1d   : > { %p767_p12 = scmp.ne.s32.totalorder %s1286_s1, %s766_s10  ;;  %p773_p5 = scmp.lt.u32.totalorder %s766_s10, %s1286_s1 }
  0x1f   : > { %p769_p0 = pnand %p768_p13, %p767_p12 }
  0x21   : > { %p770_p3 = pneg %p769_p0 }
  0x23   : > { %p775_p7 = pnand %p773_p5, %p770_p3 }
  0x25   : > { %778 = shalt.err (!%p775_p7)
}
  0x26   : > { %s779_s15 = scalar_lea.vmem %s1042_s28, 1536  ;;  %p787_p2 = scmp.lt.s32.totalorder %s1042_s28, %s1042_s28 }
  0x27   : > { %p780_p9 = scmp.ne.s32.totalorder %s1042_s28, %s779_s15  ;;  %p788_p6 = scmp.lt.s32.totalorder %s779_s15, %s779_s15 }
  0x29   : > { %p782_p10 = pnand %p780_p9, %p768_p13  ;;  %p789_p4 = por %p788_p6, %p787_p2 }
  0x2b   : > { %p783_p1 = pneg %p782_p10 }
  0x2d   : > { %p790_p8 = pnand %p789_p4, %p783_p1 }
  0x2f   : > { %793 = shalt.err (!%p790_p8)
}
  0x30   : > { %s957_s16 = smov 384   ;;  %s958_s17 = smov 24  }
  0x31   : > { %709 = dma.hbm_to_vmem [thread:$0]  (!%p1049_p11), %s1286_s1, 1536, %s1042_s28, [#allocation6], %s957_s16, %s957_s16, %s958_s17  }
  0x32   : > { %p31_p2 = scmp.eq.s32.totalorder %s30_s7, 0  ;;  %p40_p1 = scmp.ne.s32.totalorder %s950_s20, %s946_s19 }
  0x33   : > { %p41_p4 = scmp.eq.s32.totalorder %s954_s21, 0  ;;  %p725_p6 = scmp.lt.s32.totalorder %s954_s21, 2 }
  0x34   : > { %s1085_s9 = scalar_select %p31_p2, %s950_s20, %s33_s6  }
  0x35   : > { %p42_p8 = por %p41_p4, %p40_p1  ;;  %p1287_p10 = scmp.eq.s32.totalorder %s1017_s22, 1 }
  0x36   : > { %s206_s11 = sand.u32 1, %s950_s20   ;;  %s647_s12 = sshll.u32 %s954_s21, 7 }
  0x37   : > { %p1089_p12 = por %p1287_p10, %p40_p1  ;;  %s646_s13 = sshll.u32 %s206_s11, 3 }
  0x38   : > { %s1289_s0 = sld [smem:[#allocation15_spill]]  ;;  %s210_s28 = scalar_lea.vmem [#allocation2], %s646_s13 }
  0x39   : > { %s217_s6 = sshll.u32 %s210_s28, 4  ;;  %p1100_p11 = pnand %p725_p6, %p42_p8  ;;  %s1104_s6 = int_to_ptr.vmem [resolvable:$true] %s217_s6 }
  0x3a   : > { %s207_s16 = scalar_lea.sflag [#allocation3], %s206_s11 }
  0x3b   : > { %p796_p0 = pneg %p1100_p11 }
  0x3e   : > { %s1098_s15 = scalar_lea.hbm %s1289_s0, %s647_s12  ;;  %s799_s12 = scalar_lea.hbm %s1289_s0, 256 }
  0x3f   : > { %s794_s17 = scalar_lea.hbm %s1098_s15, 128  ;;  %p800_p7 = scmp.lt.u32.totalorder %s1098_s15, %s1289_s0 }
  0x40   : > { %p795_p13 = scmp.ne.s32.totalorder %s1098_s15, %s794_s17  ;;  %p801_p9 = scmp.lt.u32.totalorder %s799_s12, %s794_s17 }
  0x41   : > { %p803_p1 = scmp.lt.u32.totalorder %s794_s17, %s1098_s15 }
  0x42   : > { %p797_p3 = pnand %p796_p0, %p795_p13  ;;  %p802_p2 = por %p801_p9, %p800_p7 }
  0x44   : > { %p798_p5 = pneg %p797_p3  ;;  %p804_p4 = por %p803_p1, %p802_p2 }
  0x46   : > { %p805_p6 = pnand %p804_p4, %p798_p5 }
  0x48   : > { %808 = shalt.err (!%p805_p6)
}
  0x49   : > { %s809_s11 = scalar_lea.vmem %s1104_s6, 128  ;;  %s959_s14 = smov [#allocation2]  }
  0x4a   : > { %p810_p8 = scmp.ne.s32.totalorder %s1104_s6, %s809_s11  ;;  %s814_s28 = sshll.u32 %s959_s14, 4  ;;  %s815_s28 = int_to_ptr.vmem [resolvable:$false] %s814_s28 }
  0x4b   : > { %s816_s27 = scalar_lea.vmem %s815_s28, 256  ;;  %p817_p3 = scmp.lt.s32.totalorder %s1104_s6, %s815_s28 }
  0x4c   : > { %p812_p10 = pnand %p810_p8, %p796_p0  ;;  %p818_p7 = scmp.lt.s32.totalorder %s816_s27, %s809_s11 }
  0x4e   : > { %p813_p13 = pneg %p812_p10  ;;  %p819_p9 = por %p818_p7, %p817_p3 }
  0x50   : > { %p820_p2 = pnand %p819_p9, %p813_p13 }
  0x52   : > { %823 = shalt.err (!%p820_p2)
}
  0x53   : > { %713 = dma.hbm_to_vmem [thread:$0]  (!%p1100_p11), %s1098_s15, 128, %s1104_s6, %s207_s16  }
  0x54   : > { %p1291_p5 = scmp.ne.s32.totalorder %s1284_s26, 0 }
  0x55   : > { %s1134_s17 = sand.u32 (!%p1291_p5), 1, %s946_s19   ;;  %p1292_p0 = scmp.ne.s32.totalorder (!%p1291_p5), %s1282_s24, 0 }
  0x56   : > { %226 = sbr.rel (%p1291_p5) target bundleno = 383 (0x17f), region = 32  ;;  %s1137_s8 = sshll.u32 (!%p1291_p5), %s1134_s17, 3 }
  0x57   : > { %s229_s12 = scalar_lea.sflag (!%p1291_p5), [#allocation3], %s1134_s17  ;;  %s232_s13 = scalar_lea.vmem (!%p1291_p5), [#allocation2], %s1137_s8 }
  0x5d   : > { %925 = dma.done.wait (%p1292_p0), %s229_s12, 128  }
  0x5e   : > { %927 = vsyncadd (%p1292_p0), %s229_s12, 4294967168  ;;  %p1293_p11 = scmp.eq.s32.totalorder %s1017_s22, 0 }
  0x60   : > { %929 = dma.done.wait (%p1293_p11), [#allocation6], 1536   ;;  %p1294_p1 = pmov %p1293_p11 }
  0x61   : > { %v960_v0 = vmov 0.0|0.0   ;;  %v961_v1 = vmov 0.0   ;;  %vm962_vm0 = vmmov 0   ;;  %v275_v2 = vld [vmem:[#allocation5 + $0x8] sm:$0xff]  ;;  %v278_v3 = vld [vmem:[#allocation5 + $0x20] sm:$0xff]  ;;  %v277_v6 = vld [vmem:[#allocation5 + $0x18] sm:$0xff]  ;;  %v288_v21 = vlaneseq }
  0x62   : > { %931 = vsyncadd (%p1294_p1), [#allocation6], 4294965760  ;;  %688 = vmatprep.subr.bf16.mxu1 %v960_v0  ;;  %371 = vmatprep.mubr.f32.mxu0 %v961_v1  ;;  %v274_v4 = vld [vmem:[#allocation5] sm:$0xff]  ;;  %v680_v5 = vpack.c.bf16 %v278_v3, %v275_v2  ;;  %v276_v7 = vld [vmem:[#allocation5 + $0x10] sm:$0xff]  ;;  %vm303_vm1 = vcmask 261120   ;;  %s659_s6 = sshll.u32 %s1017_s22, 7 }
  0x63   : > { %677 = vmatprep.mubr.msk.f32.mxu1 %vm962_vm0, %v961_v1  ;;  %v279_v8 = vld [vmem:[#allocation5 + $0x28] sm:$0xff]  ;;  %v682_v9 = vpack.c.bf16 %v277_v6, %v274_v4  ;;  %v281_v11 = vld [vmem:[#allocation5 + $0x38] sm:$0xff]  ;;  %v284_v12 = vld [vmem:[#allocation5 + $0x50] sm:$0xff]  ;;  %v289_v22 = vshrl.u32 %v288_v21, 7  ;;  %s258_s7 = scalar_lea.vmem [#allocation7], %s1137_s8  ;;  %s272_s29 = scalar_lea.vmem [#allocation10], %s1137_s8 }
  0x64   : > { %v689_v10 = vpack.c.bf16 %v279_v8, %v276_v7  ;;  %v280_v13 = vld [vmem:[#allocation5 + $0x30] sm:$0xff]  ;;  %681 = vmatprep.subr.bf16.mxu0 %v680_v5  ;;  %v684_v14 = vpack.c.bf16 %v284_v12, %v281_v11  ;;  %v283_v15 = vld [vmem:[#allocation5 + $0x48] sm:$0xff]  ;;  %v282_v16 = vld [vmem:[#allocation5 + $0x40] sm:$0xff]  ;;  %s475_s16 = sshll.u32 %s258_s7, 4  ;;  %s501_s11 = sshll.u32 %s272_s29, 4  ;;  %s1164_s16 = int_to_ptr.vmem [resolvable:$true] %s475_s16  ;;  %s1178_s11 = int_to_ptr.vmem [resolvable:$true] %s501_s11 }
  0x65   : > { %v285_v17 = vld [vmem:[#allocation5 + $0x58] sm:$0xff]  ;;  %683 = vmatpush1.bf16.msra.mxu0 %v682_v9  ;;  %v686_v18 = vpack.c.bf16 %v283_v15, %v280_v13  ;;  %v290_v23 = vsub.s32 0, %v289_v22  ;;  %v298_v24 = vsub.s32 2, %v289_v22  ;;  %v286_v25 = vld [vmem:[%s1272_s2] sm:$0x7]  ;;  %v294_v26 = vsub.s32 1, %v289_v22  ;;  %s1169_s26 = scalar_lea.hbm %s1274_s4, %s659_s6  ;;  %s1176_s27 = scalar_lea.hbm %s1275_s5, %s659_s6 }
  0x66   : > { %690 = vmatpush3.bf16.msra.mxu1 %v689_v10  ;;  %v692_v19 = vpack.c.bf16 %v285_v17, %v282_v16  ;;  %685 = vmatprep.subr.bf16.mxu0 %v684_v14  ;;  %v273_v20 = vld [vmem:[%s232_s13] sm:$0xff]  ;;  %s265_s14 = scalar_lea.vmem [#allocation8], %s1137_s8  ;;  %s1162_s13 = scalar_lea.hbm %s1273_s3, %s659_s6 }
  0x67   : > { %691 = vmatprep.subr.bf16.mxu1 %v960_v0  ;;  %v291_v27 = vrot.slane %v286_v25, %v290_v23  ;;  %v299_v28 = vrot.slane %v286_v25, %v298_v24  ;;  %v295_v29 = vrot.slane %v286_v25, %v294_v26  ;;  %s488_s28 = sshll.u32 %s265_s14, 4  ;;  %s452_s12 = scalar_lea.sflag [#allocation4], %s1134_s17  ;;  %s1171_s28 = int_to_ptr.vmem [resolvable:$true] %s488_s28 }
  0x68   : > { %s824_s0 = scalar_lea.vmem %s1164_s16, 128  ;;  %s963_s8 = smov [#allocation7]  }
  0x69   : > { %687 = vmatpush1.bf16.msra.mxu0 %v686_v18  ;;  %p825_p4 = scmp.ne.s32.totalorder %s1164_s16, %s824_s0  ;;  %s828_s24 = sshll.u32 %s963_s8, 4  ;;  %s829_s24 = int_to_ptr.vmem [resolvable:$false] %s828_s24 }
  0x6a   : > { %693 = vmatpush3.bf16.msra.mxu1 %v692_v19  ;;  %s830_s1 = scalar_lea.vmem %s829_s24, 256  ;;  %p831_p10 = scmp.lt.s32.totalorder %s1164_s16, %s829_s24 }
  0x6b   : > { %p826_p6 = pnand %p825_p4, %p1089_p12  ;;  %p832_p13 = scmp.lt.s32.totalorder %s830_s1, %s824_s0 }
  0x6c   : > { %654 = vmatmul.mubr.msk.f32.vlgmr.msra.gmra.mrb[0].mxu0 %vm303_vm1, %v273_v20 }
  0x6d   : > { %678 = vmatmul.mubr.msk.f32.vlgmr.msra.gmra.mrb[0].mxu1 %vm303_vm1, %v273_v20  ;;  %p827_p8 = pneg %p826_p6  ;;  %p833_p3 = por %p832_p13, %p831_p10 }
  0x6f   : > { %p834_p7 = pnand %p833_p3, %p827_p8 }
 0x13f   : > { %v373_v30 = vpop.f32.mrb[0].mxu0 }
 0x140   : > { %v444_v31 = vpop.f32.mrb[0].mxu1  ;;  %v374_v32 = vadd.f32 %v373_v30, %v291_v27  ;;  %v375_v33 = vpop.f32.mrb[1].mxu0 }
 0x141   : > { %v445_v34 = vadd.f32 %v444_v31, %v299_v28  ;;  %v679_v35 = vpop.f32.mrb[1].mxu1  ;;  %v376_v36 = vadd.f32 %v375_v33, %v295_v29 }
 0x142   : > { %448 = vst [vmem:[%s258_s7] sm:$0xff] %v374_v32 }
 0x143   : > { %450 = vst [vmem:[%s272_s29] sm:$0xff] %v445_v34  ;;  %449 = vst [vmem:[%s265_s14] sm:$0xff] %v376_v36 }
 0x144   : > { %837 = shalt.err (!%p834_p7)
}
 0x145   : > { %s838_s23 = scalar_lea.hbm %s1162_s13, 128  ;;  %s842_s6 = scalar_lea.hbm %s1273_s3, 256 }
 0x146   : > { %p839_p9 = scmp.ne.s32.totalorder %s1162_s13, %s838_s23  ;;  %p843_p0 = scmp.lt.u32.totalorder %s1162_s13, %s1273_s3 }
 0x147   : > { %p844_p11 = scmp.lt.u32.totalorder %s842_s6, %s838_s23  ;;  %p846_p4 = scmp.lt.u32.totalorder %s838_s23, %s1162_s13 }
 0x148   : > { %p840_p2 = pnand %p839_p9, %p1089_p12 }
 0x149   : > { %p845_p1 = por %p844_p11, %p843_p0 }
 0x14a   : > { %p841_p5 = pneg %p840_p2 }
 0x14b   : > { %p847_p6 = por %p846_p4, %p845_p1 }
 0x14d   : > { %p848_p8 = pnand %p847_p6, %p841_p5 }
 0x14f   : > { %851 = shalt.err (!%p848_p8)
}
 0x150   : > { %700 = dma.vmem_to_hbm [thread:$0]  (%p1089_p12), %s1164_s16, 128, %s1162_s13, %s452_s12  }
 0x151   : > { %s1295_s0 = sand.u32 1, %s1017_s22   ;;  %s852_s14 = scalar_lea.vmem %s1171_s28, 128 }
 0x152   : > { %s1204_s1 = scalar_lea.sflag [#allocation9], %s1295_s0  ;;  %p853_p10 = scmp.ne.s32.totalorder %s1171_s28, %s852_s14 }
 0x153   : > { %s964_s8 = smov [#allocation8]  }
 0x154   : > { %p854_p13 = pnand %p853_p10, %p1089_p12  ;;  %s856_s24 = sshll.u32 %s964_s8, 4  ;;  %s857_s24 = int_to_ptr.vmem [resolvable:$false] %s856_s24 }
 0x155   : > { %s858_s23 = scalar_lea.vmem %s857_s24, 256  ;;  %p859_p7 = scmp.lt.s32.totalorder %s1171_s28, %s857_s24 }
 0x156   : > { %p855_p3 = pneg %p854_p13  ;;  %p860_p9 = scmp.lt.s32.totalorder %s858_s23, %s852_s14 }
 0x158   : > { %p861_p2 = por %p860_p9, %p859_p7 }
 0x15a   : > { %p862_p5 = pnand %p861_p2, %p855_p3 }
 0x15c   : > { %865 = shalt.err (!%p862_p5)
}
 0x15d   : > { %s866_s22 = scalar_lea.hbm %s1169_s26, 128  ;;  %s870_s12 = scalar_lea.hbm %s1274_s4, 256 }
 0x15e   : > { %p867_p0 = scmp.ne.s32.totalorder %s1169_s26, %s866_s22  ;;  %p871_p4 = scmp.lt.u32.totalorder %s1169_s26, %s1274_s4 }
 0x15f   : > { %p872_p6 = scmp.lt.u32.totalorder %s870_s12, %s866_s22  ;;  %p874_p10 = scmp.lt.u32.totalorder %s866_s22, %s1169_s26 }
 0x160   : > { %p868_p11 = pnand %p867_p0, %p1089_p12 }
 0x161   : > { %p873_p8 = por %p872_p6, %p871_p4 }
 0x162   : > { %p869_p1 = pneg %p868_p11 }
 0x163   : > { %p875_p13 = por %p874_p10, %p873_p8 }
 0x165   : > { %p876_p3 = pnand %p875_p13, %p869_p1 }
 0x167   : > { %879 = shalt.err (!%p876_p3)
}
 0x168   : > { %701 = dma.vmem_to_hbm [thread:$0]  (%p1089_p12), %s1171_s28, 128, %s1169_s26, %s1204_s1  }
 0x169   : > { %s880_s6 = scalar_lea.vmem %s1178_s11, 128  ;;  %s965_s7 = smov [#allocation10]  }
 0x16a   : > { %p881_p7 = scmp.ne.s32.totalorder %s1178_s11, %s880_s6  ;;  %s884_s29 = sshll.u32 %s965_s7, 4  ;;  %s885_s29 = int_to_ptr.vmem [resolvable:$false] %s884_s29 }
 0x16b   : > { %s886_s0 = scalar_lea.vmem %s885_s29, 256  ;;  %p887_p5 = scmp.lt.s32.totalorder %s1178_s11, %s885_s29 }
 0x16c   : > { %p882_p9 = pnand %p881_p7, %p1089_p12  ;;  %p888_p0 = scmp.lt.s32.totalorder %s886_s0, %s880_s6 }
 0x16e   : > { %p883_p2 = pneg %p882_p9  ;;  %p889_p11 = por %p888_p0, %p887_p5 }
 0x170   : > { %p890_p1 = pnand %p889_p11, %p883_p2 }
 0x172   : > { %893 = shalt.err (!%p890_p1)
}
 0x173   : > { %s894_s28 = scalar_lea.hbm %s1176_s27, 128  ;;  %s898_s8 = scalar_lea.hbm %s1275_s5, 256 }
 0x174   : > { %p895_p4 = scmp.ne.s32.totalorder %s1176_s27, %s894_s28  ;;  %p899_p10 = scmp.lt.u32.totalorder %s1176_s27, %s1275_s5 }
 0x175   : > { %p900_p13 = scmp.lt.u32.totalorder %s898_s8, %s894_s28  ;;  %p902_p7 = scmp.lt.u32.totalorder %s894_s28, %s1176_s27 }
 0x176   : > { %p896_p6 = pnand %p895_p4, %p1089_p12 }
 0x177   : > { %p901_p3 = por %p900_p13, %p899_p10 }
 0x178   : > { %p897_p8 = pneg %p896_p6 }
 0x179   : > { %p903_p9 = por %p902_p7, %p901_p3 }
 0x17b   : > { %p904_p2 = pnand %p903_p9, %p897_p8 }
 0x17d   : > { %907 = shalt.err (!%p904_p2)
}
 0x17e   : > { %702 = dma.vmem_to_hbm [thread:$0]  (%p1089_p12), %s1178_s11, 128, %s1176_s27, %s1204_s1  }
 0x17f PF: > { %s513_s22 = sand.u32 1, %s942_s18   ;;  %p1296_p5 = scmp.ne.s32.totalorder %s1283_s25, 0 }
 0x180   : > { %p1297_p0 = scmp.ge.s32.totalorder %s954_s21, 2  ;;  %s514_s16 = scalar_lea.sflag [#allocation4], %s513_s22 }
 0x182   : > { %p715_p11 = pnand %p1297_p0, %p1296_p5 }
 0x184   : > { %933 = dma.done.wait (!%p715_p11), %s514_s16, 128  }
 0x185   : > { %935 = vsyncadd (!%p715_p11), %s514_s16, 4294967168  ;;  %s1298_s13 = sadd.s32 4294967294, %s954_s21  }
 0x186   : > { %s522_s12 = sand.u32 1, %s1298_s13  }
 0x187   : > { %s523_s17 = scalar_lea.sflag [#allocation9], %s522_s12 }
 0x188   : > { %937 = dma.done.wait (!%p715_p11), %s523_s17, 256  }
 0x189   : > { %939 = vsyncadd (!%p715_p11), %s523_s17, 4294967040  ;;  %p23_p12 = scmp.ge.s32.totalorder %s1054_s30, 4   ;;  %s1299_s18 = smov %s946_s19 }
 0x18a   : > { %s1300_s19 = smov %s950_s20  ;;  %s1301_s20 = smov %s1085_s9 }
 0x18b   : > { %s1302_s21 = smov %s1054_s30  ;;  %25 = sbr.rel (!%p23_p12) target bundleno = 11 (0xb), region = 113 }
 0x192   :  { %537 = vsyncpa [#allocation3], 1 }
 0x193   :  { %539 = vsyncpa [#allocation3 + $0x1], 1 }
 0x194   :  { %540 = vsyncpa [#allocation6], 1 }
 0x195   :  { %541 = vsyncpa [#allocation4], 1 }
 0x196   :  { %543 = vsyncpa [#allocation4 + $0x1], 1 }
 0x197   :  { %544 = vsyncpa [#allocation9], 1 }
 0x198   :  { %546 = vsyncpa [#allocation9 + $0x1], 1 }

</bundles_post_ra>
